<compile_context>
chip_gen: v6e
topology: v6e:2x2x1
jax: 0.10.0
libtpu: 0.0.40
codegen_flags: <defaults>
</compile_context>

<pallas_src>
import jax
import jax.numpy as jnp
from jax.experimental import pallas as pl
from jax.experimental.pallas import tpu as pltpu

HIDDEN = 64          # per-modality feature size (HateMM uses 64)
NUM_CLASSES = 2
D_TEXT, D_VID, D_AUD = 32, 32, 32   # synthetic sub-model input feature dims

_DEFAULT_TM = 8192          # batch rows per tile; sweep 4096-16384 per chip
_MIN_PALLAS_BATCH = 4096    # below this, plain XLA beats the custom-call cost
_MEGACORE_MIN_ROWS = 2048   # split into >=2 tiles so v7x can shard the batch


def combined_kernel(xa_ref, w_ref, b_ref, out_ref):
    # Single fused matmul + bias: (tile_rows, D_AUD) @ (D_AUD, C) + (1, C).
    # Default MXU f32 precision (multi-pass bf16) -> tiny drift vs the HIGHEST
    # precision reference; acceptable per review (contraction dim is only 32).
    out_ref[...] = jnp.dot(xa_ref[...], w_ref[...],
                           preferred_element_type=jnp.float32) + b_ref[...]


def _round_up(x, m):
    return ((x + m - 1) // m) * m


def _pick_tile_rows(batch, tm_max):
    """Row-tile size: a multiple of 8 (sublane) or exactly `batch`."""
    if batch > tm_max:
        return tm_max                          # >= 2 grid steps automatically
    if batch >= _MEGACORE_MIN_ROWS:
        # Keep >= 2 grid steps so the "parallel" batch axis can shard across
        # v7x's two TensorCores instead of serialising on one.
        return min(_round_up(pl.cdiv(batch, 2), 8), tm_max)
    # Single block whose row count equals the full batch dim (always a legal
    # BlockSpec, even when batch % 8 != 0); grid collapses to one step.
    return batch


def combined_model(x_text, x_vid, x_audio, params, *, tm=_DEFAULT_TM,
                   min_pallas_batch=_MIN_PALLAS_BATCH, force_pallas=False):
    """Forward pass of Combined_model (all three inputs present).

    x_text / x_vid mirror the module signature but are mathematically dead:
    they reach the output only through zeros_like, so they are never read
    (saves 3 matmuls, the lane-axis concat and 8 operand DMAs).
    """
    del x_text, x_vid
    batch = x_audio.shape[0]
    w = params["w_fused"]            # (D_AUD, NUM_CLASSES)
    b = params["b_fused"]            # (1, NUM_CLASSES)

    if batch < min_pallas_batch and not force_pallas:
        # Small/medium batch: the (B,32)@(32,2) problem is nanoseconds of
        # work; fused XLA has far lower launch overhead than a Pallas call.
        return jnp.dot(x_audio, w, precision=jax.lax.Precision.HIGHEST) + b

    tile_rows = _pick_tile_rows(batch, tm)
    n_tiles = pl.cdiv(batch, tile_rows)
    # No jnp.pad / out[:B]: Pallas masks stores of the ragged last block and
    # there is no reduction over the batch axis, so out-of-bounds rows can
    # never contaminate valid outputs.  Padding would double HBM traffic.
    return pl.pallas_call(
        combined_kernel,
        out_shape=jax.ShapeDtypeStruct((batch, NUM_CLASSES), jnp.float32),
        grid_spec=pltpu.PrefetchScalarGridSpec(
            num_scalar_prefetch=0,
            grid=(n_tiles,),
            in_specs=[
                pl.BlockSpec((tile_rows, D_AUD), lambda i: (i, 0)),
                pl.BlockSpec((D_AUD, NUM_CLASSES), lambda i: (0, 0)),
                pl.BlockSpec((1, NUM_CLASSES), lambda i: (0, 0)),
            ],
            out_specs=pl.BlockSpec((tile_rows, NUM_CLASSES), lambda i: (i, 0)),
        ),
        compiler_params=pltpu.CompilerParams(
            dimension_semantics=("parallel",)),
    )(x_audio, w, b)


def _linear_init(key, fan_in, fan_out):
    # PyTorch nn.Linear default init: U(-1/sqrt(fan_in), 1/sqrt(fan_in)).
    kw, kb = jax.random.split(key)
    bound = 1.0 / jnp.sqrt(jnp.float32(fan_in))
    # weight stored pre-transposed as (fan_in, fan_out) so x @ W
    w = jax.random.uniform(kw, (fan_in, fan_out), jnp.float32, -bound, bound)
    b = jax.random.uniform(kb, (1, fan_out), jnp.float32, -bound, bound)
    return w, b


def init_params(key):
    k1, k2, k3, k4 = jax.random.split(key, 4)
    wt, bt = _linear_init(k1, D_TEXT, HIDDEN)
    wv, bv = _linear_init(k2, D_VID, HIDDEN)
    wa, ba = _linear_init(k3, D_AUD, HIDDEN)
    wf, bf = _linear_init(k4, 3 * HIDDEN, NUM_CLASSES)

    # Fold the audio sub-model into the audio slice of the fusion weight
    # (text/video branches feed zeros_like -> contribute nothing).
    hp = jax.lax.Precision.HIGHEST
    wf_aud = wf[2 * HIDDEN:3 * HIDDEN, :]                       # (HIDDEN, C)
    w_fused = jnp.dot(wa, wf_aud, precision=hp)                 # (D_AUD, C)
    b_fused = jnp.dot(ba, wf_aud, precision=hp) + bf            # (1, C)

    return dict(wt=wt, bt=bt, wv=wv, bv=bv, wa=wa, ba=ba, wf=wf, bf=bf,
                w_fused=w_fused, b_fused=b_fused)


def reference(x_text, x_vid, x_audio, p):
    # Faithful (unfused) translation of Combined_model.forward.
    hp = jax.lax.Precision.HIGHEST
    tex = jnp.dot(x_text, p["wt"], precision=hp) + p["bt"]
    vid = jnp.dot(x_vid, p["wv"], precision=hp) + p["bv"]
    aud = jnp.dot(x_audio, p["wa"], precision=hp) + p["ba"]
    inp = jnp.concatenate(
        [jnp.zeros_like(tex), jnp.zeros_like(vid), aud], axis=1)
    return jnp.dot(inp, p["wf"], precision=hp) + p["bf"]


if __name__ == "__main__":
    key = jax.random.PRNGKey(0)
    kp, kt, kv, ka, kb = jax.random.split(key, 5)
    params = init_params(kp)

    # --- Small-shape test (batch=2), forced through the Pallas kernel. ---
    B = 2
    x_text = jax.random.normal(kt, (B, D_TEXT), jnp.float32)
    x_vid = jax.random.normal(kv, (B, D_VID), jnp.float32)
    x_audio = jax.random.normal(ka, (B, D_AUD), jnp.float32)

    out = jax.block_until_ready(
        combined_model(x_text, x_vid, x_audio, params, force_pallas=True))
    ref = reference(x_text, x_vid, x_audio, params)
    assert out.shape == (B, NUM_CLASSES)
    assert jnp.allclose(out, ref, atol=1e-4, rtol=1e-4)

    # Default dispatch at this batch takes the fused-XLA fast path; same math.
    out_xla = jax.block_until_ready(
        combined_model(x_text, x_vid, x_audio, params))
    assert jnp.allclose(out_xla, ref, atol=1e-4, rtol=1e-4)

    # --- Larger ragged batch: exercises the tiled grid (2 "parallel" steps,
    # masked ragged last block, no padding) used by the big-batch path. ---
    B2 = 5000
    xa2 = jax.random.normal(kb, (B2, D_AUD), jnp.float32)
    xt2 = jnp.zeros((B2, D_TEXT), jnp.float32)
    xv2 = jnp.zeros((B2, D_VID), jnp.float32)
    out2 = jax.block_until_ready(
        combined_model(xt2, xv2, xa2, params, force_pallas=True))
    ref2 = reference(xt2, xv2, xa2, params)
    assert out2.shape == (B2, NUM_CLASSES)
    assert jnp.allclose(out2, ref2, atol=1e-4, rtol=1e-4)

    print("KERNEL_OK")
</pallas_src>

<mosaic_0001>
module attributes {stable_mosaic.version = 11 : i64} {
  func.func @combined_kernel(%arg0: i32, %arg1: memref<2x32xf32, #tpu.memory_space<vmem>>, %arg2: memref<32x2xf32, #tpu.memory_space<vmem>>, %arg3: memref<1x2xf32, #tpu.memory_space<vmem>>, %arg4: memref<2x2xf32, #tpu.memory_space<vmem>>) attributes {dimension_semantics = [#tpu.dimension_semantics<parallel>], iteration_bounds = array<i64: 1>, scalar_prefetch = 0 : i64, scratch_operands = 0 : i64, tpu.core_type = #tpu.core_type<tc>, window_params = [{transform_indices = @transform_0, window_bounds = array<i64: 2, 32>}, {pipeline_mode = #tpu.pipeline_mode<synchronous>, transform_indices = @transform_1, window_bounds = array<i64: 32, 2>}, {pipeline_mode = #tpu.pipeline_mode<synchronous>, transform_indices = @transform_2, window_bounds = array<i64: 1, 2>}, {transform_indices = @transform_3, window_bounds = array<i64: 2, 2>}]} {
    %c0 = arith.constant 0 : index
    %c0_0 = arith.constant 0 : index
    %0 = vector.load %arg1[%c0, %c0_0] : memref<2x32xf32, #tpu.memory_space<vmem>>, vector<2x32xf32>
    %c0_1 = arith.constant 0 : index
    %c0_2 = arith.constant 0 : index
    %1 = vector.load %arg2[%c0_1, %c0_2] : memref<32x2xf32, #tpu.memory_space<vmem>>, vector<32x2xf32>
    %cst = arith.constant dense<0.000000e+00> : vector<2x2xf32>
    %2 = tpu.matmul %0, %1, %cst {dimension_numbers = #tpu.dot_dimension_numbers<[1], [0], [0], [1], [0, 0, 1, 1], [], []>} : vector<2x32xf32>, vector<32x2xf32>, vector<2x2xf32> -> vector<2x2xf32>
    %c0_3 = arith.constant 0 : index
    %c0_4 = arith.constant 0 : index
    %3 = vector.load %arg3[%c0_3, %c0_4] : memref<1x2xf32, #tpu.memory_space<vmem>>, vector<1x2xf32>
    %4 = vector.broadcast %3 : vector<1x2xf32> to vector<2x2xf32>
    %5 = arith.addf %2, %4 : vector<2x2xf32>
    %c0_5 = arith.constant 0 : index
    %c0_6 = arith.constant 0 : index
    %6 = vector.load %arg4[%c0_5, %c0_6] : memref<2x2xf32, #tpu.memory_space<vmem>>, vector<2x2xf32>
    tpu.vector_store %arg4[%c0_5, %c0_6], %5 {strides = array<i32>} : memref<2x2xf32, #tpu.memory_space<vmem>>, vector<2x2xf32>,
    return
  }
  func.func @transform_0(%arg0: i32) -> (i32, i32) {
    %c0_i32 = arith.constant 0 : i32
    %c0_i32_0 = arith.constant 0 : i32
    return %arg0, %c0_i32 : i32, i32
  }
  func.func @transform_1(%arg0: i32) -> (i32, i32) {
    %c0_i32 = arith.constant 0 : i32
    %c0_i32_0 = arith.constant 0 : i32
    %c0_i32_1 = arith.constant 0 : i32
    return %c0_i32, %c0_i32_0 : i32, i32
  }
  func.func @transform_2(%arg0: i32) -> (i32, i32) {
    %c0_i32 = arith.constant 0 : i32
    %c0_i32_0 = arith.constant 0 : i32
    %c0_i32_1 = arith.constant 0 : i32
    return %c0_i32, %c0_i32_0 : i32, i32
  }
  func.func @transform_3(%arg0: i32) -> (i32, i32) {
    %c0_i32 = arith.constant 0 : i32
    %c0_i32_0 = arith.constant 0 : i32
    return %arg0, %c0_i32 : i32, i32
  }
}

</mosaic_0001>

<bundles_post_ra>
// kernel: tpu_custom_call.1
= control target key start
LH: loop header
LB: loop body
LE: loop exit
PB: predicated region body
PF: predicated region fallthrough
CT: control target
= control target key end

     0   :  { %v160_v1 = vmov 0.0   ;;  %vm161_vm0 = vmmov 0   ;;  %s204_s0 = inlined_call_operand.vmem [shape: f32[2,32], index: 0, kind: input, shape index: {}]   ;;  %s205_s1 = inlined_call_operand.vmem [shape: f32[32,2], index: 1, kind: input, shape index: {}]   ;;  %s206_s2 = inlined_call_operand.vmem [shape: f32[1,2], index: 2, kind: input, shape index: {}]   ;;  %s207_s3 = inlined_call_operand.hbm [shape: f32[2,2], index: 3, kind: output, shape index: {}]  }
   0x1   :  { %v19_v0 = vld [vmem:[%s205_s1 + $0x18] sm:$0xff]  ;;  %124 = vmatprep.subr.mxu0 %v160_v1  ;;  %v18_v2 = vld [vmem:[%s205_s1 + $0x10] sm:$0xff]  ;;  %132 = vmatprep.mubr.msk.f32.mxu0 %vm161_vm0, %v160_v1 }
   0x2   :  { %125 = vmatpush3.msra.mxu0 %v19_v0 }
   0x3   :  { %8 = vsyncpa [#allocation3], 0  ;;  %126 = vmatprep.subr.mxu0 %v160_v1  ;;  %v17_v3 = vld [vmem:[%s205_s1 + $0x8] sm:$0xff]  ;;  %v16_v4 = vld [vmem:[%s205_s1] sm:$0xff]  ;;  %vm27_vm1 = vcmask 261120   ;;  %s162_s24 = smov [#allocation2]  }
   0x4   :  { %127 = vmatpush3.msra.mxu0 %v18_v2  ;;  %v15_v5 = vld [vmem:[%s204_s0] sm:$0x3]  ;;  %s109_s25 = sshll.u32 %s162_s24, 4  ;;  %vm101_vm2 = vcmask 9216   ;;  %s110_s25 = int_to_ptr.vmem [resolvable:$true] %s109_s25 }
   0x5   :  { %128 = vmatprep.subr.mxu0 %v160_v1  ;;  %v117_v6 = vld [vmem:[%s206_s2] ss:$0 sm:$0xff]  ;;  %s138_s1 = scalar_lea.vmem %s110_s25, 32  ;;  %p143_p1 = scmp.lt.s32.totalorder %s110_s25, %s110_s25 }
   0x6   :  { %129 = vmatpush3.msra.mxu0 %v17_v3  ;;  %p139_p0 = scmp.ne.s32.totalorder %s110_s25, %s138_s1  ;;  %p144_p2 = scmp.lt.s32.totalorder %s138_s1, %s138_s1 }
   0x7   :  { %130 = vmatprep.subr.mxu0 %v160_v1 }
   0x8   :  { %131 = vmatpush3.msra.mxu0 %v16_v4  ;;  %p145_p3 = por %p144_p2, %p143_p1 }
   0x9   :  { %133 = vmatmul.mubr.msk.f32.vlgmr.msra.gmra.mxu0 %vm27_vm1, %v15_v5 }
   0xa   :  { %p146_p4 = pnand %p145_p3, %p139_p0 }
  0xc9   :  { %v97_v7 = vpop.f32.mrf.mxu0 }
  0xca   :  { %v98_v8 = vadd.f32 %v117_v6, %v97_v7 }
  0xcb   :  { %v134_v9 = vpop.f32.mrf.mxu0 }
  0xcc   :  { %102 = vst.msk [vmem:[#allocation2] sm:$0x3] %vm101_vm2, %v98_v8 }
  0xcd   :  { %149 = shalt.err (!%p146_p4)
}
  0xce   :  { %112 = dma.vmem_to_hbm [thread:$0]  %s110_s25, 32, %s207_s3, [#allocation3]  }
  0xcf   :  { %158 = dma.done.wait [#allocation3], 32  }
  0xd0   :  { %159 = vsyncadd [#allocation3], 4294967264 }
  0xd1   :  { %116 = vsyncpa [#allocation3], 1 }

</bundles_post_ra>
